<compile_context>
chip_gen: v5e
topology: v5e:2x2
jax: 0.10.0
libtpu: 0.0.40
codegen_flags: <defaults>
</compile_context>

<pallas_src>
import functools

import jax
import jax.numpy as jnp
from jax.experimental import pallas as pl
from jax.experimental.pallas import tpu as pltpu


def _round_up(n, m):
    return ((n + m - 1) // m) * m


def actor_critic_kernel(x_ref, w1_ref, b1_ref, wh_ref, bh_ref, out_ref, *, action_dim):
    # x:  [TB, D]  (bf16/f32)       w1: [D, H]  (bf16/f32)   b1: [1, H]  f32
    # wh: [H, NP]  fused heads      bh: [1, NP] f32          out:[TB, NP] f32
    #   wh columns [0, A) = actor weights, column A = critic weights, rest zero-padding.
    x = x_ref[...]

    # fc1 + ReLU : MXU matmul with f32 accumulation, elementwise in f32.
    h = jnp.dot(x, w1_ref[...], preferred_element_type=jnp.float32) + b1_ref[...]
    h = jnp.maximum(h, 0.0)

    # Fused actor+critic head: one lane-dense matmul into NP(=128) output lanes.
    fused = jnp.dot(h.astype(wh_ref.dtype), wh_ref[...],
                    preferred_element_type=jnp.float32) + bh_ref[...]

    col = jax.lax.broadcasted_iota(jnp.int32, fused.shape, dimension=1)
    is_act = col < action_dim

    # Numerically stable softmax over the actor lanes only.  Mask BEFORE exp so the
    # critic / pad lanes contribute exactly 0 and cannot overflow.
    masked = jnp.where(is_act, fused, -jnp.inf)
    m = jnp.max(masked, axis=-1, keepdims=True)
    e = jnp.exp(masked - m)                      # pad/critic lanes -> exp(-inf) = 0
    denom = jnp.sum(e, axis=-1, keepdims=True)
    pi = e / denom                               # exact reciprocal -> rows sum to 1

    # Lane-dense output slab: pi in lanes [0, A), critic value in lane A, zeros elsewhere.
    out = jnp.where(is_act, pi, jnp.where(col == action_dim, fused, 0.0))
    out_ref[...] = out.astype(out_ref.dtype)


@functools.partial(jax.jit, static_argnames=("action_dim", "block_b"))
def actor_critic_forward(x, w1_t, b1, wh_t, bh, *, action_dim, block_b=512):
    """x: [B, input_dim]. Weights must come from prepare_params (pre-transposed / fused)."""
    B, D = x.shape
    H = w1_t.shape[1]
    NP = wh_t.shape[1]

    # Row tile: largest multiple of 8 up to block_b; pad batch to a whole number of tiles.
    TB = min(block_b, _round_up(B, 8))
    B_pad = _round_up(B, TB)
    xw = x.astype(w1_t.dtype)
    if B_pad != B:
        xw = jnp.pad(xw, ((0, B_pad - B), (0, 0)))

    out = pl.pallas_call(
        functools.partial(actor_critic_kernel, action_dim=action_dim),
        out_shape=jax.ShapeDtypeStruct((B_pad, NP), jnp.float32),
        grid=(B_pad // TB,),
        in_specs=[
            pl.BlockSpec((TB, D), lambda i: (i, 0)),   # x tile (pipelined over batch)
            pl.BlockSpec((D, H), lambda i: (0, 0)),    # w1 (resident)
            pl.BlockSpec((1, H), lambda i: (0, 0)),    # b1
            pl.BlockSpec((H, NP), lambda i: (0, 0)),   # fused heads weight
            pl.BlockSpec((1, NP), lambda i: (0, 0)),   # fused heads bias
        ],
        out_specs=pl.BlockSpec((TB, NP), lambda i: (i, 0)),
        compiler_params=pltpu.CompilerParams(
            dimension_semantics=("parallel",),         # shards batch tiles across TCs on v7x
            vmem_limit_bytes=32 * 1024 * 1024,
        ),
    )(xw, w1_t, b1, wh_t, bh)

    pi = out[:B, :action_dim]
    v = out[:B, action_dim:action_dim + 1]
    return pi, v


def prepare_params(params, compute_dtype=jnp.bfloat16):
    """One-time prep: transpose to [in, out], fuse+lane-pad the heads, cast MXU operands."""
    H, D = params["w1"].shape
    A = params["wa"].shape[0]
    NP = _round_up(A + 1, 128)                       # actor lanes + critic lane, padded to 128

    w1_t = params["w1"].T.astype(compute_dtype)      # [D, H]
    b1 = params["b1"].reshape(1, H).astype(jnp.float32)

    wh = jnp.zeros((H, NP), jnp.float32)
    wh = wh.at[:, :A].set(params["wa"].T)            # actor weights
    wh = wh.at[:, A].set(params["wc"][0])            # critic weights
    bh = jnp.zeros((1, NP), jnp.float32)
    bh = bh.at[0, :A].set(params["ba"])
    bh = bh.at[0, A].set(params["bc"][0])

    return {
        "w1_t": w1_t,
        "b1": b1,
        "wh_t": wh.astype(compute_dtype),
        "bh": bh,
        "action_dim": A,
    }


def init_params(key, input_dim, action_dim, hidden=128):
    """Deterministic synthetic init, PyTorch nn.Linear weight shapes [out, in]."""
    k1, k2, k3, k4, k5, k6 = jax.random.split(key, 6)
    s1 = 1.0 / jnp.sqrt(input_dim)
    s2 = 1.0 / jnp.sqrt(hidden)
    return {
        "w1": jax.random.uniform(k1, (hidden, input_dim), jnp.float32, -s1, s1),
        "b1": jax.random.uniform(k2, (hidden,), jnp.float32, -s1, s1),
        "wa": jax.random.uniform(k3, (action_dim, hidden), jnp.float32, -s2, s2),
        "ba": jax.random.uniform(k4, (action_dim,), jnp.float32, -s2, s2),
        "wc": jax.random.uniform(k5, (1, hidden), jnp.float32, -s2, s2),
        "bc": jax.random.uniform(k6, (1,), jnp.float32, -s2, s2),
    }


def reference_forward(x, params):
    """Pure-JAX f32 reference matching the PyTorch module semantics."""
    h = jnp.maximum(x @ params["w1"].T + params["b1"], 0.0)
    logits = h @ params["wa"].T + params["ba"]
    pi = jax.nn.softmax(logits, axis=-1)
    v = h @ params["wc"].T + params["bc"]
    return pi, v


if __name__ == "__main__":
    key = jax.random.PRNGKey(0)
    kx, kp = jax.random.split(key)

    batch = 8
    input_dim = 16
    action_dim = 8

    x = jax.random.normal(kx, (batch, input_dim), jnp.float32)
    params = init_params(kp, input_dim, action_dim)
    prep = prepare_params(params, compute_dtype=jnp.bfloat16)

    pi, v = actor_critic_forward(
        x, prep["w1_t"], prep["b1"], prep["wh_t"], prep["bh"],
        action_dim=prep["action_dim"],
    )
    pi = jax.block_until_ready(pi)
    v = jax.block_until_ready(v)

    pi_ref, v_ref = reference_forward(x, params)
    assert pi.shape == (batch, action_dim) and v.shape == (batch, 1)
    # bf16 MXU operands -> loosened tolerances vs f32 reference
    assert jnp.allclose(pi, pi_ref, atol=5e-2, rtol=5e-2)
    assert jnp.allclose(v, v_ref, atol=5e-2, rtol=5e-2)
    # softmax rows sum to 1 (exact reciprocal in-kernel)
    assert jnp.allclose(jnp.sum(pi, axis=-1), jnp.ones((batch,)), atol=1e-3)

    print("KERNEL_OK")
</pallas_src>

<mosaic_0001>
module attributes {stable_mosaic.version = 11 : i64} {
  func.func @actor_critic_kernel(%arg0: i32, %arg1: memref<8x16xbf16, #tpu.memory_space<vmem>>, %arg2: memref<16x128xbf16, #tpu.memory_space<vmem>>, %arg3: memref<1x128xf32, #tpu.memory_space<vmem>>, %arg4: memref<128x128xbf16, #tpu.memory_space<vmem>>, %arg5: memref<1x128xf32, #tpu.memory_space<vmem>>, %arg6: memref<8x128xf32, #tpu.memory_space<vmem>>) attributes {dimension_semantics = [#tpu.dimension_semantics<parallel>], iteration_bounds = array<i64: 1>, scalar_prefetch = 0 : i64, scratch_operands = 0 : i64, tpu.core_type = #tpu.core_type<tc>, window_params = [{transform_indices = @transform_0, window_bounds = array<i64: 8, 16>}, {pipeline_mode = #tpu.pipeline_mode<synchronous>, transform_indices = @transform_1, window_bounds = array<i64: 16, 128>}, {pipeline_mode = #tpu.pipeline_mode<synchronous>, transform_indices = @transform_2, window_bounds = array<i64: 1, 128>}, {pipeline_mode = #tpu.pipeline_mode<synchronous>, transform_indices = @transform_3, window_bounds = array<i64: 128, 128>}, {pipeline_mode = #tpu.pipeline_mode<synchronous>, transform_indices = @transform_4, window_bounds = array<i64: 1, 128>}, {transform_indices = @transform_5, window_bounds = array<i64: 8, 128>}]} {
    %c0 = arith.constant 0 : index
    %c0_0 = arith.constant 0 : index
    %0 = vector.load %arg1[%c0, %c0_0] : memref<8x16xbf16, #tpu.memory_space<vmem>>, vector<8x16xbf16>
    %c0_1 = arith.constant 0 : index
    %c0_2 = arith.constant 0 : index
    %1 = vector.load %arg2[%c0_1, %c0_2] : memref<16x128xbf16, #tpu.memory_space<vmem>>, vector<16x128xbf16>
    %cst = arith.constant dense<0.000000e+00> : vector<8x128xf32>
    %2 = tpu.matmul %0, %1, %cst {dimension_numbers = #tpu.dot_dimension_numbers<[1], [0], [0], [1], [0, 0, 1, 1], [], []>} : vector<8x16xbf16>, vector<16x128xbf16>, vector<8x128xf32> -> vector<8x128xf32>
    %c0_3 = arith.constant 0 : index
    %c0_4 = arith.constant 0 : index
    %3 = vector.load %arg3[%c0_3, %c0_4] : memref<1x128xf32, #tpu.memory_space<vmem>>, vector<1x128xf32>
    %4 = vector.broadcast %3 : vector<1x128xf32> to vector<8x128xf32>
    %5 = arith.addf %2, %4 : vector<8x128xf32>
    %cst_5 = arith.constant 0.000000e+00 : f32
    %6 = vector.broadcast %cst_5 : f32 to vector<8x128xf32>
    %7 = arith.maximumf %5, %6 : vector<8x128xf32>
    %8 = arith.truncf %7 : vector<8x128xf32> to vector<8x128xbf16>
    %c0_6 = arith.constant 0 : index
    %c0_7 = arith.constant 0 : index
    %9 = vector.load %arg4[%c0_6, %c0_7] : memref<128x128xbf16, #tpu.memory_space<vmem>>, vector<128x128xbf16>
    %cst_8 = arith.constant dense<0.000000e+00> : vector<8x128xf32>
    %10 = tpu.matmul %8, %9, %cst_8 {dimension_numbers = #tpu.dot_dimension_numbers<[1], [0], [0], [1], [0, 0, 1, 1], [], []>} : vector<8x128xbf16>, vector<128x128xbf16>, vector<8x128xf32> -> vector<8x128xf32>
    %c0_9 = arith.constant 0 : index
    %c0_10 = arith.constant 0 : index
    %11 = vector.load %arg5[%c0_9, %c0_10] : memref<1x128xf32, #tpu.memory_space<vmem>>, vector<1x128xf32>
    %12 = vector.broadcast %11 : vector<1x128xf32> to vector<8x128xf32>
    %13 = arith.addf %10, %12 : vector<8x128xf32>
    %14 = tpu.iota {dimensions = array<i32: 1>} : vector<8x128xi32>
    %c8_i32 = arith.constant 8 : i32
    %15 = vector.broadcast %c8_i32 : i32 to vector<8x128xi32>
    %16 = arith.cmpi slt, %14, %15 : vector<8x128xi32>
    %cst_11 = arith.constant 0xFF800000 : f32
    %17 = vector.broadcast %cst_11 : f32 to vector<8x128xf32>
    %18 = arith.select %16, %13, %17 : vector<8x128xi1>, vector<8x128xf32>
    %cst_12 = arith.constant dense<0xFF800000> : vector<8xf32>
    %19 = vector.multi_reduction <maximumf>, %18, %cst_12 [1] : vector<8x128xf32> to vector<8xf32>
    %20 = vector.shape_cast %19 : vector<8xf32> to vector<8x1xf32>
    %21 = vector.broadcast %20 : vector<8x1xf32> to vector<8x128xf32>
    %22 = arith.subf %18, %21 : vector<8x128xf32>
    %23 = math.exp %22 : vector<8x128xf32>
    %cst_13 = arith.constant dense<0.000000e+00> : vector<8xf32>
    %24 = vector.multi_reduction <add>, %23, %cst_13 [1] : vector<8x128xf32> to vector<8xf32>
    %25 = vector.shape_cast %24 : vector<8xf32> to vector<8x1xf32>
    %26 = vector.broadcast %25 : vector<8x1xf32> to vector<8x128xf32>
    %27 = arith.divf %23, %26 : vector<8x128xf32>
    %c8_i32_14 = arith.constant 8 : i32
    %28 = vector.broadcast %c8_i32_14 : i32 to vector<8x128xi32>
    %29 = arith.cmpi eq, %14, %28 : vector<8x128xi32>
    %cst_15 = arith.constant 0.000000e+00 : f32
    %30 = vector.broadcast %cst_15 : f32 to vector<8x128xf32>
    %31 = arith.select %29, %13, %30 : vector<8x128xi1>, vector<8x128xf32>
    %32 = arith.select %16, %27, %31 : vector<8x128xi1>, vector<8x128xf32>
    %c0_16 = arith.constant 0 : index
    %c0_17 = arith.constant 0 : index
    %33 = vector.load %arg6[%c0_16, %c0_17] : memref<8x128xf32, #tpu.memory_space<vmem>>, vector<8x128xf32>
    tpu.vector_store %arg6[%c0_16, %c0_17], %32 {strides = array<i32>} : memref<8x128xf32, #tpu.memory_space<vmem>>, vector<8x128xf32>,
    return
  }
  func.func @transform_0(%arg0: i32) -> (i32, i32) {
    %c0_i32 = arith.constant 0 : i32
    %c0_i32_0 = arith.constant 0 : i32
    return %arg0, %c0_i32 : i32, i32
  }
  func.func @transform_1(%arg0: i32) -> (i32, i32) {
    %c0_i32 = arith.constant 0 : i32
    %c0_i32_0 = arith.constant 0 : i32
    %c0_i32_1 = arith.constant 0 : i32
    return %c0_i32, %c0_i32_0 : i32, i32
  }
  func.func @transform_2(%arg0: i32) -> (i32, i32) {
    %c0_i32 = arith.constant 0 : i32
    %c0_i32_0 = arith.constant 0 : i32
    %c0_i32_1 = arith.constant 0 : i32
    return %c0_i32, %c0_i32_0 : i32, i32
  }
  func.func @transform_3(%arg0: i32) -> (i32, i32) {
    %c0_i32 = arith.constant 0 : i32
    %c0_i32_0 = arith.constant 0 : i32
    %c0_i32_1 = arith.constant 0 : i32
    return %c0_i32, %c0_i32_0 : i32, i32
  }
  func.func @transform_4(%arg0: i32) -> (i32, i32) {
    %c0_i32 = arith.constant 0 : i32
    %c0_i32_0 = arith.constant 0 : i32
    %c0_i32_1 = arith.constant 0 : i32
    return %c0_i32, %c0_i32_0 : i32, i32
  }
  func.func @transform_5(%arg0: i32) -> (i32, i32) {
    %c0_i32 = arith.constant 0 : i32
    %c0_i32_0 = arith.constant 0 : i32
    return %arg0, %c0_i32 : i32, i32
  }
}

</mosaic_0001>

<bundles_post_ra>
// kernel: actor_critic_forward.1
= control target key start
LH: loop header
LB: loop body
LE: loop exit
PB: predicated region body
PF: predicated region fallthrough
CT: control target
= control target key end

     0   :  { %10 = vsyncpa [#allocation3], 0  ;;  %s266_s21 = smov [#allocation2]   ;;  %s267_s23 = smov 64   ;;  %s319_s0 = inlined_call_operand.vmem [shape: bf16[8,16], index: 0, kind: input, shape index: {}]   ;;  %s320_s1 = inlined_call_operand.vmem [shape: bf16[16,128], index: 1, kind: input, shape index: {}]   ;;  %s321_s2 = inlined_call_operand.vmem [shape: f32[1,128], index: 2, kind: input, shape index: {}]   ;;  %s322_s3 = inlined_call_operand.hbm [shape: bf16[128,128], index: 3, kind: input, shape index: {}]   ;;  %s323_s4 = inlined_call_operand.vmem [shape: f32[1,128], index: 4, kind: input, shape index: {}]   ;;  %s324_s5 = inlined_call_operand.vmem [shape: f32[8,128], index: 5, kind: output, shape index: {}]  }
   0x1   :  { %s21_s20 = sshll.u32 %s322_s3, 4  ;;  %s23_s22 = sshll.u32 %s266_s21, 4  ;;  %s22_s20 = int_to_ptr.hbm [resolvable:$true] %s21_s20  ;;  %s24_s22 = int_to_ptr.vmem [resolvable:$true] %s23_s22 }
   0x2   :  { %s268_s24 = smov 4  }
   0x3   :  { %29 = dma.hbm_to_vmem [thread:$0]  %s22_s20, 1024, %s24_s22, [#allocation3], %s267_s23, %s267_s23, %s268_s24  }
   0x4   :  { %264 = dma.done.wait [#allocation3], 1024  }
   0x5   :  { %265 = vsyncadd [#allocation3], 4294966272  ;;  %v222_v0 = vld [vmem:[%s320_s1] sm:$0xff]  ;;  %v230_v1 = vld [vmem:[#allocation2 + $0x38] sm:$0xff]  ;;  %vm50_vm0 = vcmask 130048   ;;  %v150_v16 = vlaneseq }
   0x6   :  { %61 = vmatpush.bf16.msra.mxu0 %v222_v0  ;;  %v37_v2 = vld [vmem:[%s319_s0] sm:$0xf]  ;;  %137 = vmatpush.bf16.msra.mxu1 %v230_v1  ;;  %v229_v3 = vld [vmem:[#allocation2 + $0x30] sm:$0xff]  ;;  %v228_v4 = vld [vmem:[#allocation2 + $0x28] sm:$0xff] }
   0x7   :  { %v227_v5 = vld [vmem:[#allocation2 + $0x20] sm:$0xff]  ;;  %v226_v6 = vld [vmem:[#allocation2 + $0x18] sm:$0xff]  ;;  %v225_v7 = vld [vmem:[#allocation2 + $0x10] sm:$0xff]  ;;  %v151_v17 = vand.u32 127, %v150_v16 }
   0x8   :  { %v224_v8 = vld [vmem:[#allocation2 + $0x8] sm:$0xff]  ;;  %v223_v9 = vld [vmem:[#allocation2] sm:$0xff] }
   0x9   :  { %189 = vmatmul.msk.bf16.vlgmr.msra.gmra.mxu0 %vm50_vm0, %v37_v2  ;;  %v234_v10 = vld [vmem:[%s321_s2] ss:$0 sm:$0xff]  ;;  %vm176_vm1 = vcmp.eq.s32.totalorder %v151_v17, 8  ;;  %vm152_vm2 = vcmp.lt.s32.totalorder %v151_v17, 8 }
   0xa   :  { %138 = vmatpush.bf16.msra.mxu1 %v229_v3  ;;  %v235_v18 = vld [vmem:[%s323_s4] ss:$0 sm:$0xff] }
   0xe   :  { %139 = vmatpush.bf16.msra.mxu1 %v228_v4 }
  0x12   :  { %140 = vmatpush.bf16.msra.mxu1 %v227_v5 }
  0x16   :  { %141 = vmatpush.bf16.msra.mxu1 %v226_v6 }
  0x1a   :  { %142 = vmatpush.bf16.msra.mxu1 %v225_v7 }
  0x1e   :  { %143 = vmatpush.bf16.msra.mxu1 %v224_v8 }
  0x22   :  { %144 = vmatpush.bf16.msra.mxu1 %v223_v9 }
  0x86   :  { %v63_v11 = vpop.f32.mrf.mxu0 }
  0x87   :  { %v64_v12 = vadd.f32 %v234_v10, %v63_v11 }
  0x89   :  { %v67_v13 = vmax.f32 %v64_v12, 0.0 }
  0x8b   :  { %v68_v14 = vpack.c.bf16 %v67_v13, %v67_v13 }
  0x8d   :  { %145 = vmatmul.bf16.vlgmr.msra.gmra.mxu1 %v68_v14 }
  0x8e   :  { %v65_v15 = vpop.f32.mrf.mxu0 }
 0x10a   :  { %v146_v19 = vpop.f32.mrf.mxu1 }
 0x10b   :  { %v147_v20 = vadd.f32 %v235_v18, %v146_v19 }
 0x10d   :  { %v177_v21 = vsel %vm176_vm1, %v147_v20, 0.0  ;;  %v153_v22 = vsel %vm152_vm2, %v147_v20, -inf }
 0x10e   :  { %154 = vmax.xlane.f32.xlu0 %v153_v22 }
 0x112   :  { %v148_v23 = vpop.f32.mrf.mxu1 }
 0x181   :  { %v155_v24 = vpop.xlane.xlu0 %154 }
 0x182   :  { %v156_v25 = vsub.f32 %v153_v22, %v155_v24 }
 0x184   :  { %v157_v26 = vmul.f32 1.442695, %v156_v25 }
 0x186   :  { %236 = vpow2.f32 %v157_v26 }
 0x18c   :  { %v237_v27 = vpop.eup %236 }
 0x18d   :  { %159 = vadd.xlane.f32.xlu0 %v237_v27 }
 0x200   :  { %v160_v28 = vpop.xlane.xlu0 %159 }
 0x201   :  { %238 = vrcp.f32 %v160_v28  ;;  %v172_v32 = vand.u32 2147483648, %v160_v28  ;;  %v170_v34 = vand.u32 2147483647, %v160_v28  ;;  %vm166_vm4 = vweird.f32 %v160_v28 }
 0x203   :  { %v173_v36 = vor.u32 1.1754944e-38, %v172_v32  ;;  %vm171_vm6 = vcmp.eq.f32.partialorder %v170_v34, 8.507059e+37 }
 0x207   :  { %v239_v29 = vpop.eup %238 }
 0x208   :  { %v162_v30 = vmul.f32 %v239_v29, %v160_v28  ;;  %vm167_vm3 = vweird.f32 %v239_v29 }
 0x209   :  { %vm168_vm5 = vmor %vm166_vm4, %vm167_vm3 }
 0x20a   :  { %v163_v31 = vsub.f32 1.0, %v162_v30 }
 0x20c   :  { %v164_v33 = vmul.f32 %v239_v29, %v163_v31 }
 0x20e   :  { %v165_v35 = vadd.f32 %v239_v29, %v164_v33 }
 0x210   :  { %v169_v37 = vsel %vm168_vm5, %v239_v29, %v165_v35 }
 0x211   :  { %v174_v38 = vsel %vm171_vm6, %v173_v36, %v169_v37 }
 0x212   :  { %v175_v39 = vmul.f32 %v237_v27, %v174_v38 }
 0x214   :  { %v178_v40 = vsel %vm152_vm2, %v175_v39, %v177_v21 }
 0x215   :  { %179 = vst [vmem:[%s324_s5] sm:$0xff] %v178_v40 }
 0x216   :  { %184 = vsyncpa [#allocation3], 1 }

</bundles_post_ra>
